<compile_context>
chip_gen: v5e
topology: v5e:2x2
jax: 0.10.0
libtpu: 0.0.40
codegen_flags: <defaults>
</compile_context>

<pallas_src>
import functools

import jax
import jax.numpy as jnp
from jax.experimental import pallas as pl
from jax.experimental.pallas import tpu as pltpu

BN_EPS = 1e-5  # PyTorch nn.BatchNorm2d default


# ----------------------------- Pallas kernels ------------------------------ #

def _accum_taps(x_ref, w_ref, r, *, stride, th, wo):
    """Sum of the 9 conv taps as shifted dots; returns (th*wo, TN) f32.

    x_ref: (1, s*s, Hq, Wq, Cin) parity-split padded activations.
    w_ref: (9, Cin, TN) bf16 weights with BN scale folded in.
    """
    tm = th * wo
    acc = None
    for kh in range(3):
        for kw in range(3):
            pp = (kh % stride) * stride + (kw % stride)     # parity plane
            oh, ow = kh // stride, kw // stride             # in-plane offset
            patch = x_ref[0, pp,
                          pl.ds(pl.multiple_of(r * th, th) + oh, th),
                          pl.ds(ow, wo), :]
            patch = patch.reshape(tm, patch.shape[-1])
            d = jnp.dot(patch, w_ref[kh * 3 + kw],
                        preferred_element_type=jnp.float32)
            acc = d if acc is None else acc + d
    return acc


def _conv_bn_kernel(x_ref, w_ref, shift_ref, out_ref, *, stride, th, wo, relu):
    # conv3x3 + folded-BN (+ ReLU)
    r = pl.program_id(1)
    y = _accum_taps(x_ref, w_ref, r, stride=stride, th=th, wo=wo) + shift_ref[...]
    if relu:
        y = jnp.maximum(y, 0.0)
    out_ref[0] = y.astype(out_ref.dtype)


def _conv_bn_add_relu_kernel(x_ref, w_ref, shift_ref, res_ref, out_ref,
                             *, stride, th, wo):
    # conv3x3 + folded-BN + identity residual add + ReLU
    r = pl.program_id(1)
    y = _accum_taps(x_ref, w_ref, r, stride=stride, th=th, wo=wo) + shift_ref[...]
    y = y + res_ref[0].astype(jnp.float32)
    out_ref[0] = jnp.maximum(y, 0.0).astype(out_ref.dtype)


def _conv_bn_proj_relu_kernel(x_ref, w_ref, shift_ref, xs_ref, wsc_ref, out_ref,
                              *, stride, th, wo):
    # conv3x3 + folded-BN + fused 1x1 projection shortcut (10th tap) + ReLU
    r = pl.program_id(1)
    y = _accum_taps(x_ref, w_ref, r, stride=stride, th=th, wo=wo)
    y = y + jnp.dot(xs_ref[0], wsc_ref[...], preferred_element_type=jnp.float32)
    y = y + shift_ref[...]
    out_ref[0] = jnp.maximum(y, 0.0).astype(out_ref.dtype)


# ------------------------------ kernel wrapper ------------------------------ #

def _round_up(x, m):
    return (x + m - 1) // m * m


def _pad_last(a, target):
    pads = [(0, 0)] * (a.ndim - 1) + [(0, target - a.shape[-1])]
    return jnp.pad(a, pads)


def _space_to_par(x_nhwc, stride, ho, wo):
    """(N,H,W,C) -> (N, s*s, Hq, Wq, C) with
    out[n, ph*s+pw, a, b, :] = pad1(x)[n, s*a+ph, s*b+pw, :].
    For stride 1 this is just the spatially padded tensor (free reshape)."""
    n, h, w, c = x_nhwc.shape
    s = stride
    off = 2 // s                                   # max tap offset after split
    hq, wq = ho + off, wo + off
    xp = jnp.pad(x_nhwc, ((0, 0), (1, s * hq - h - 1), (1, s * wq - w - 1), (0, 0)))
    x6 = xp.reshape(n, hq, s, wq, s, c)
    x_par = jnp.transpose(x6, (0, 2, 4, 1, 3, 5))
    return x_par.reshape(n, s * s, hq, wq, c)


def _conv3x3_block(x_nhwc, w9, shift, *, stride, relu=True,
                   residual=None, proj=None, out_dtype=jnp.bfloat16):
    """Fused conv3x3(pad=1, stride) + folded-BN shift
       [+ residual add | + fused 1x1 projection shortcut] [+ ReLU].

    x_nhwc : (N, H, W, Cin) bf16
    w9     : (9, Cin, Cout_p) bf16, BN scale already folded in
    shift  : (1, Cout_p) f32
    Returns (N, Ho, Wo, Cout_p); channels >= Cout are zero.
    """
    n, h, w, cin = x_nhwc.shape
    cout_p = w9.shape[-1]
    ho = (h - 1) // stride + 1
    wo = (w - 1) // stride + 1
    m = ho * wo

    s = stride
    x_par = _space_to_par(x_nhwc, s, ho, wo)
    hq, wq = x_par.shape[2], x_par.shape[3]

    # Output-channel tile: lane-dense; 256 feeds the 256-wide MXU on v6e/v7x.
    tn = 256 if cout_p % 256 == 0 else 128
    # Row tile: whole image when small, else split keeping (th*wo) % 8 == 0.
    th = ho
    while th % 2 == 0 and th * wo > 512 and ((th // 2) * wo) % 8 == 0:
        th //= 2
    tm = th * wo

    grid = (n, ho // th, cout_p // tn)

    in_specs = [
        pl.BlockSpec((1, s * s, hq, wq, cin), lambda b, r, c: (b, 0, 0, 0, 0)),
        pl.BlockSpec((9, cin, tn), lambda b, r, c: (0, 0, c)),
        pl.BlockSpec((1, tn), lambda b, r, c: (0, c)),
    ]
    args = [x_par, w9, shift]

    if residual is not None:
        in_specs.append(pl.BlockSpec((1, tm, tn), lambda b, r, c: (b, r, c)))
        args.append(residual)
        kernel = functools.partial(_conv_bn_add_relu_kernel, stride=s, th=th, wo=wo)
    elif proj is not None:
        xs, wsc = proj
        cs = xs.shape[-1]
        in_specs += [pl.BlockSpec((1, tm, cs), lambda b, r, c: (b, r, 0)),
                     pl.BlockSpec((cs, tn), lambda b, r, c: (0, c))]
        args += [xs, wsc]
        kernel = functools.partial(_conv_bn_proj_relu_kernel, stride=s, th=th, wo=wo)
    else:
        kernel = functools.partial(_conv_bn_kernel, stride=s, th=th, wo=wo, relu=relu)

    out = pl.pallas_call(
        kernel,
        out_shape=jax.ShapeDtypeStruct((n, m, cout_p), out_dtype),
        grid=grid,
        in_specs=in_specs,
        out_specs=pl.BlockSpec((1, tm, tn), lambda b, r, c: (b, r, c)),
        compiler_params=pltpu.CompilerParams(
            dimension_semantics=("parallel", "parallel", "parallel"),
            vmem_limit_bytes=32 * 1024 * 1024),
    )(*args)

    return out.reshape(n, ho, wo, cout_p)


# --------------------------------- Glue ------------------------------------ #

def _fold_bn(gamma, beta, mean, var):
    # Inference-mode BN folded to per-channel scale/shift.
    scale = gamma / jnp.sqrt(var + BN_EPS)
    shift = beta - mean * scale
    return scale, shift


def init_residual_block_params(key, inchannel, outchannel, stride):
    ks = jax.random.split(key, 6)

    def bn_params(k, c):
        k1, k2, k3, k4 = jax.random.split(k, 4)
        return dict(
            gamma=1.0 + 0.1 * jax.random.normal(k1, (c,), jnp.float32),
            beta=0.1 * jax.random.normal(k2, (c,), jnp.float32),
            mean=0.1 * jax.random.normal(k3, (c,), jnp.float32),
            var=0.5 + jnp.abs(jax.random.normal(k4, (c,), jnp.float32)),
        )

    p = dict(
        w1=0.2 * jax.random.normal(ks[0], (outchannel, inchannel, 3, 3), jnp.float32),
        bn1=bn_params(ks[1], outchannel),
        w2=0.2 * jax.random.normal(ks[2], (outchannel, outchannel, 3, 3), jnp.float32),
        bn2=bn_params(ks[3], outchannel),
    )
    if stride != 1 or inchannel != outchannel:
        p["wsc"] = 0.2 * jax.random.normal(ks[4], (outchannel, inchannel, 1, 1), jnp.float32)
        p["bnsc"] = bn_params(ks[5], outchannel)
    return p


def residual_block_forward(x_nchw, params, stride):
    """Pallas implementation of ResidualBlock.forward. Input/output are NCHW."""
    x = jnp.transpose(x_nchw, (0, 2, 3, 1)).astype(jnp.bfloat16)   # NHWC bf16
    n, h, w, cin = x.shape
    cout = params["w1"].shape[0]
    ho = (h - 1) // stride + 1
    wo = (w - 1) // stride + 1
    cout_p = _round_up(cout, 128)

    # conv1(stride) + BN1 + ReLU  (BN scale folded into the weights)
    s1, b1 = _fold_bn(**params["bn1"])
    w1 = jnp.transpose(params["w1"], (2, 3, 1, 0)).reshape(9, cin, cout) * s1
    w1 = _pad_last(w1, cout_p).astype(jnp.bfloat16)
    b1p = _pad_last(b1.reshape(1, cout), cout_p).astype(jnp.float32)
    y1 = _conv3x3_block(x, w1, b1p, stride=stride, relu=True,
                        out_dtype=jnp.bfloat16)                    # (N,Ho,Wo,cout_p)

    # conv2(1) + BN2 + shortcut + final ReLU, all in one kernel
    s2, b2 = _fold_bn(**params["bn2"])
    w2 = jnp.transpose(params["w2"], (2, 3, 1, 0)).reshape(9, cout, cout) * s2
    w2 = jnp.pad(w2, ((0, 0), (0, cout_p - cout), (0, cout_p - cout))).astype(jnp.bfloat16)

    if stride != 1 or cin != cout:
        # projection shortcut fused as an extra tap: xs @ (wsc*ssc), shifts merged
        ssc, bsc = _fold_bn(**params["bnsc"])
        wsc = jnp.transpose(params["wsc"], (2, 3, 1, 0)).reshape(cin, cout) * ssc
        wsc = _pad_last(wsc, cout_p).astype(jnp.bfloat16)
        shift = _pad_last((b2 + bsc).reshape(1, cout), cout_p).astype(jnp.float32)
        xs = x[:, ::stride, ::stride, :].reshape(n, ho * wo, cin)
        out = _conv3x3_block(y1, w2, shift, stride=1,
                             proj=(xs, wsc), out_dtype=jnp.float32)
    else:
        shift = _pad_last(b2.reshape(1, cout), cout_p).astype(jnp.float32)
        res = _pad_last(x.reshape(n, h * w, cin), cout_p)          # identity residual
        out = _conv3x3_block(y1, w2, shift, stride=1,
                             residual=res, out_dtype=jnp.float32)

    if cout_p != cout:
        out = out[..., :cout]
    # TODO(synk): NHWC->NCHW transpose kept only for the PyTorch boundary contract;
    # chained blocks should stay NHWC bf16.
    return jnp.transpose(out, (0, 3, 1, 2))                        # -> NCHW f32


# -------------------------- pure-JAX reference ----------------------------- #

def residual_block_reference(x_nchw, params, stride):
    x = jnp.transpose(x_nchw, (0, 2, 3, 1)).astype(jnp.float32)

    def conv(inp, w_oihw, s):
        w = jnp.transpose(w_oihw, (2, 3, 1, 0))     # OIHW -> HWIO
        pad = ((1, 1), (1, 1)) if w.shape[0] == 3 else ((0, 0), (0, 0))
        return jax.lax.conv_general_dilated(
            inp, w, (s, s), pad, dimension_numbers=("NHWC", "HWIO", "NHWC"))

    def bn(y, p):
        return (y - p["mean"]) / jnp.sqrt(p["var"] + BN_EPS) * p["gamma"] + p["beta"]

    left = jax.nn.relu(bn(conv(x, params["w1"], stride), params["bn1"]))
    left = bn(conv(left, params["w2"], 1), params["bn2"])
    if stride != 1 or x.shape[-1] != params["w1"].shape[0]:
        sc = bn(conv(x, params["wsc"], stride), params["bnsc"])
    else:
        sc = x
    out = jax.nn.relu(left + sc)
    return jnp.transpose(out, (0, 3, 1, 2))


# --------------------------------- main ------------------------------------ #

if __name__ == "__main__":
    key = jax.random.PRNGKey(0)
    kx, kp1, kp2 = jax.random.split(key, 3)

    x = jax.random.normal(kx, (2, 4, 16, 16), jnp.float32)   # NCHW, like PyTorch

    # Case 1: downsampling block with projection shortcut (4 -> 8 ch, stride 2)
    p1 = init_residual_block_params(kp1, 4, 8, stride=2)
    out1 = jax.block_until_ready(residual_block_forward(x, p1, stride=2))
    ref1 = residual_block_reference(x, p1, stride=2)
    assert out1.shape == (2, 8, 8, 8), out1.shape
    # bf16 activations/weights on the MXU path -> loosened tolerance vs f32 ref.
    assert jnp.allclose(out1, ref1, rtol=5e-2, atol=5e-2)

    # Case 2: identity shortcut (4 -> 4 ch, stride 1)
    p2 = init_residual_block_params(kp2, 4, 4, stride=1)
    out2 = jax.block_until_ready(residual_block_forward(x, p2, stride=1))
    ref2 = residual_block_reference(x, p2, stride=1)
    assert out2.shape == (2, 4, 16, 16), out2.shape
    assert jnp.allclose(out2, ref2, rtol=5e-2, atol=5e-2)

    print("KERNEL_OK")
</pallas_src>

<mosaic_0001>
module attributes {stable_mosaic.version = 11 : i64} {
  func.func @_conv_bn_kernel(%arg0: i32, %arg1: i32, %arg2: i32, %arg3: memref<1x4x9x9x4xbf16, #tpu.memory_space<vmem>>, %arg4: memref<9x4x128xbf16, #tpu.memory_space<vmem>>, %arg5: memref<1x128xf32, #tpu.memory_space<vmem>>, %arg6: memref<1x64x128xbf16, #tpu.memory_space<vmem>>) attributes {dimension_semantics = [#tpu.dimension_semantics<parallel>, #tpu.dimension_semantics<parallel>, #tpu.dimension_semantics<parallel>], iteration_bounds = array<i64: 2, 1, 1>, scalar_prefetch = 0 : i64, scratch_operands = 0 : i64, tpu.core_type = #tpu.core_type<tc>, window_params = [{transform_indices = @transform_0, window_bounds = array<i64: 1, 4, 9, 9, 4>}, {transform_indices = @transform_1, window_bounds = array<i64: 9, 4, 128>}, {transform_indices = @transform_2, window_bounds = array<i64: 1, 128>}, {transform_indices = @transform_3, window_bounds = array<i64: 1, 64, 128>}]} {
    %c8_i32 = arith.constant 8 : i32
    %0 = arith.muli %arg1, %c8_i32 : i32
    %1 = tpu.assume_multiple %0, 8 : i32
    %c0_i32 = arith.constant 0 : i32
    %2 = arith.addi %1, %c0_i32 : i32
    %c0 = arith.constant 0 : index
    %c0_0 = arith.constant 0 : index
    %3 = arith.index_cast %2 : i32 to index
    %c0_1 = arith.constant 0 : index
    %c0_2 = arith.constant 0 : index
    %4 = vector.load %arg3[%c0, %c0_0, %3, %c0_1, %c0_2] : memref<1x4x9x9x4xbf16, #tpu.memory_space<vmem>>, vector<1x1x8x8x4xbf16>
    %5 = vector.shape_cast %4 : vector<1x1x8x8x4xbf16> to vector<8x8x4xbf16>
    %6 = vector.shape_cast %5 : vector<8x8x4xbf16> to vector<64x4xbf16>
    %c0_3 = arith.constant 0 : index
    %c0_4 = arith.constant 0 : index
    %c0_5 = arith.constant 0 : index
    %7 = vector.load %arg4[%c0_3, %c0_4, %c0_5] : memref<9x4x128xbf16, #tpu.memory_space<vmem>>, vector<1x4x128xbf16>
    %8 = vector.shape_cast %7 : vector<1x4x128xbf16> to vector<4x128xbf16>
    %cst = arith.constant dense<0.000000e+00> : vector<64x128xf32>
    %9 = tpu.matmul %6, %8, %cst {dimension_numbers = #tpu.dot_dimension_numbers<[1], [0], [0], [1], [0, 0, 1, 1], [], []>} : vector<64x4xbf16>, vector<4x128xbf16>, vector<64x128xf32> -> vector<64x128xf32>
    %c8_i32_6 = arith.constant 8 : i32
    %10 = arith.muli %arg1, %c8_i32_6 : i32
    %11 = tpu.assume_multiple %10, 8 : i32
    %c0_i32_7 = arith.constant 0 : i32
    %12 = arith.addi %11, %c0_i32_7 : i32
    %c0_8 = arith.constant 0 : index
    %c1 = arith.constant 1 : index
    %13 = arith.index_cast %12 : i32 to index
    %c0_9 = arith.constant 0 : index
    %c0_10 = arith.constant 0 : index
    %14 = vector.load %arg3[%c0_8, %c1, %13, %c0_9, %c0_10] : memref<1x4x9x9x4xbf16, #tpu.memory_space<vmem>>, vector<1x1x8x8x4xbf16>
    %15 = vector.shape_cast %14 : vector<1x1x8x8x4xbf16> to vector<8x8x4xbf16>
    %16 = vector.shape_cast %15 : vector<8x8x4xbf16> to vector<64x4xbf16>
    %c1_11 = arith.constant 1 : index
    %c0_12 = arith.constant 0 : index
    %c0_13 = arith.constant 0 : index
    %17 = vector.load %arg4[%c1_11, %c0_12, %c0_13] : memref<9x4x128xbf16, #tpu.memory_space<vmem>>, vector<1x4x128xbf16>
    %18 = vector.shape_cast %17 : vector<1x4x128xbf16> to vector<4x128xbf16>
    %cst_14 = arith.constant dense<0.000000e+00> : vector<64x128xf32>
    %19 = tpu.matmul %16, %18, %cst_14 {dimension_numbers = #tpu.dot_dimension_numbers<[1], [0], [0], [1], [0, 0, 1, 1], [], []>} : vector<64x4xbf16>, vector<4x128xbf16>, vector<64x128xf32> -> vector<64x128xf32>
    %20 = arith.addf %9, %19 : vector<64x128xf32>
    %c8_i32_15 = arith.constant 8 : i32
    %21 = arith.muli %arg1, %c8_i32_15 : i32
    %22 = tpu.assume_multiple %21, 8 : i32
    %c0_i32_16 = arith.constant 0 : i32
    %23 = arith.addi %22, %c0_i32_16 : i32
    %c0_17 = arith.constant 0 : index
    %c0_18 = arith.constant 0 : index
    %24 = arith.index_cast %23 : i32 to index
    %c1_19 = arith.constant 1 : index
    %c0_20 = arith.constant 0 : index
    %25 = vector.load %arg3[%c0_17, %c0_18, %24, %c1_19, %c0_20] : memref<1x4x9x9x4xbf16, #tpu.memory_space<vmem>>, vector<1x1x8x8x4xbf16>
    %26 = vector.shape_cast %25 : vector<1x1x8x8x4xbf16> to vector<8x8x4xbf16>
    %27 = vector.shape_cast %26 : vector<8x8x4xbf16> to vector<64x4xbf16>
    %c2 = arith.constant 2 : index
    %c0_21 = arith.constant 0 : index
    %c0_22 = arith.constant 0 : index
    %28 = vector.load %arg4[%c2, %c0_21, %c0_22] : memref<9x4x128xbf16, #tpu.memory_space<vmem>>, vector<1x4x128xbf16>
    %29 = vector.shape_cast %28 : vector<1x4x128xbf16> to vector<4x128xbf16>
    %cst_23 = arith.constant dense<0.000000e+00> : vector<64x128xf32>
    %30 = tpu.matmul %27, %29, %cst_23 {dimension_numbers = #tpu.dot_dimension_numbers<[1], [0], [0], [1], [0, 0, 1, 1], [], []>} : vector<64x4xbf16>, vector<4x128xbf16>, vector<64x128xf32> -> vector<64x128xf32>
    %31 = arith.addf %20, %30 : vector<64x128xf32>
    %c8_i32_24 = arith.constant 8 : i32
    %32 = arith.muli %arg1, %c8_i32_24 : i32
    %33 = tpu.assume_multiple %32, 8 : i32
    %c0_i32_25 = arith.constant 0 : i32
    %34 = arith.addi %33, %c0_i32_25 : i32
    %c0_26 = arith.constant 0 : index
    %c2_27 = arith.constant 2 : index
    %35 = arith.index_cast %34 : i32 to index
    %c0_28 = arith.constant 0 : index
    %c0_29 = arith.constant 0 : index
    %36 = vector.load %arg3[%c0_26, %c2_27, %35, %c0_28, %c0_29] : memref<1x4x9x9x4xbf16, #tpu.memory_space<vmem>>, vector<1x1x8x8x4xbf16>
    %37 = vector.shape_cast %36 : vector<1x1x8x8x4xbf16> to vector<8x8x4xbf16>
    %38 = vector.shape_cast %37 : vector<8x8x4xbf16> to vector<64x4xbf16>
    %c3 = arith.constant 3 : index
    %c0_30 = arith.constant 0 : index
    %c0_31 = arith.constant 0 : index
    %39 = vector.load %arg4[%c3, %c0_30, %c0_31] : memref<9x4x128xbf16, #tpu.memory_space<vmem>>, vector<1x4x128xbf16>
    %40 = vector.shape_cast %39 : vector<1x4x128xbf16> to vector<4x128xbf16>
    %cst_32 = arith.constant dense<0.000000e+00> : vector<64x128xf32>
    %41 = tpu.matmul %38, %40, %cst_32 {dimension_numbers = #tpu.dot_dimension_numbers<[1], [0], [0], [1], [0, 0, 1, 1], [], []>} : vector<64x4xbf16>, vector<4x128xbf16>, vector<64x128xf32> -> vector<64x128xf32>
    %42 = arith.addf %31, %41 : vector<64x128xf32>
    %c8_i32_33 = arith.constant 8 : i32
    %43 = arith.muli %arg1, %c8_i32_33 : i32
    %44 = tpu.assume_multiple %43, 8 : i32
    %c0_i32_34 = arith.constant 0 : i32
    %45 = arith.addi %44, %c0_i32_34 : i32
    %c0_35 = arith.constant 0 : index
    %c3_36 = arith.constant 3 : index
    %46 = arith.index_cast %45 : i32 to index
    %c0_37 = arith.constant 0 : index
    %c0_38 = arith.constant 0 : index
    %47 = vector.load %arg3[%c0_35, %c3_36, %46, %c0_37, %c0_38] : memref<1x4x9x9x4xbf16, #tpu.memory_space<vmem>>, vector<1x1x8x8x4xbf16>
    %48 = vector.shape_cast %47 : vector<1x1x8x8x4xbf16> to vector<8x8x4xbf16>
    %49 = vector.shape_cast %48 : vector<8x8x4xbf16> to vector<64x4xbf16>
    %c4 = arith.constant 4 : index
    %c0_39 = arith.constant 0 : index
    %c0_40 = arith.constant 0 : index
    %50 = vector.load %arg4[%c4, %c0_39, %c0_40] : memref<9x4x128xbf16, #tpu.memory_space<vmem>>, vector<1x4x128xbf16>
    %51 = vector.shape_cast %50 : vector<1x4x128xbf16> to vector<4x128xbf16>
    %cst_41 = arith.constant dense<0.000000e+00> : vector<64x128xf32>
    %52 = tpu.matmul %49, %51, %cst_41 {dimension_numbers = #tpu.dot_dimension_numbers<[1], [0], [0], [1], [0, 0, 1, 1], [], []>} : vector<64x4xbf16>, vector<4x128xbf16>, vector<64x128xf32> -> vector<64x128xf32>
    %53 = arith.addf %42, %52 : vector<64x128xf32>
    %c8_i32_42 = arith.constant 8 : i32
    %54 = arith.muli %arg1, %c8_i32_42 : i32
    %55 = tpu.assume_multiple %54, 8 : i32
    %c0_i32_43 = arith.constant 0 : i32
    %56 = arith.addi %55, %c0_i32_43 : i32
    %c0_44 = arith.constant 0 : index
    %c2_45 = arith.constant 2 : index
    %57 = arith.index_cast %56 : i32 to index
    %c1_46 = arith.constant 1 : index
    %c0_47 = arith.constant 0 : index
    %58 = vector.load %arg3[%c0_44, %c2_45, %57, %c1_46, %c0_47] : memref<1x4x9x9x4xbf16, #tpu.memory_space<vmem>>, vector<1x1x8x8x4xbf16>
    %59 = vector.shape_cast %58 : vector<1x1x8x8x4xbf16> to vector<8x8x4xbf16>
    %60 = vector.shape_cast %59 : vector<8x8x4xbf16> to vector<64x4xbf16>
    %c5 = arith.constant 5 : index
    %c0_48 = arith.constant 0 : index
    %c0_49 = arith.constant 0 : index
    %61 = vector.load %arg4[%c5, %c0_48, %c0_49] : memref<9x4x128xbf16, #tpu.memory_space<vmem>>, vector<1x4x128xbf16>
    %62 = vector.shape_cast %61 : vector<1x4x128xbf16> to vector<4x128xbf16>
    %cst_50 = arith.constant dense<0.000000e+00> : vector<64x128xf32>
    %63 = tpu.matmul %60, %62, %cst_50 {dimension_numbers = #tpu.dot_dimension_numbers<[1], [0], [0], [1], [0, 0, 1, 1], [], []>} : vector<64x4xbf16>, vector<4x128xbf16>, vector<64x128xf32> -> vector<64x128xf32>
    %64 = arith.addf %53, %63 : vector<64x128xf32>
    %c8_i32_51 = arith.constant 8 : i32
    %65 = arith.muli %arg1, %c8_i32_51 : i32
    %66 = tpu.assume_multiple %65, 8 : i32
    %c1_i32 = arith.constant 1 : i32
    %67 = arith.addi %66, %c1_i32 : i32
    %c0_52 = arith.constant 0 : index
    %c0_53 = arith.constant 0 : index
    %68 = arith.index_cast %67 : i32 to index
    %c0_54 = arith.constant 0 : index
    %c0_55 = arith.constant 0 : index
    %69 = vector.load %arg3[%c0_52, %c0_53, %68, %c0_54, %c0_55] : memref<1x4x9x9x4xbf16, #tpu.memory_space<vmem>>, vector<1x1x8x8x4xbf16>
    %70 = vector.shape_cast %69 : vector<1x1x8x8x4xbf16> to vector<8x8x4xbf16>
    %71 = vector.shape_cast %70 : vector<8x8x4xbf16> to vector<64x4xbf16>
    %c6 = arith.constant 6 : index
    %c0_56 = arith.constant 0 : index
    %c0_57 = arith.constant 0 : index
    %72 = vector.load %arg4[%c6, %c0_56, %c0_57] : memref<9x4x128xbf16, #tpu.memory_space<vmem>>, vector<1x4x128xbf16>
    %73 = vector.shape_cast %72 : vector<1x4x128xbf16> to vector<4x128xbf16>
    %cst_58 = arith.constant dense<0.000000e+00> : vector<64x128xf32>
    %74 = tpu.matmul %71, %73, %cst_58 {dimension_numbers = #tpu.dot_dimension_numbers<[1], [0], [0], [1], [0, 0, 1, 1], [], []>} : vector<64x4xbf16>, vector<4x128xbf16>, vector<64x128xf32> -> vector<64x128xf32>
    %75 = arith.addf %64, %74 : vector<64x128xf32>
    %c8_i32_59 = arith.constant 8 : i32
    %76 = arith.muli %arg1, %c8_i32_59 : i32
    %77 = tpu.assume_multiple %76, 8 : i32
    %c1_i32_60 = arith.constant 1 : i32
    %78 = arith.addi %77, %c1_i32_60 : i32
    %c0_61 = arith.constant 0 : index
    %c1_62 = arith.constant 1 : index
    %79 = arith.index_cast %78 : i32 to index
    %c0_63 = arith.constant 0 : index
    %c0_64 = arith.constant 0 : index
    %80 = vector.load %arg3[%c0_61, %c1_62, %79, %c0_63, %c0_64] : memref<1x4x9x9x4xbf16, #tpu.memory_space<vmem>>, vector<1x1x8x8x4xbf16>
    %81 = vector.shape_cast %80 : vector<1x1x8x8x4xbf16> to vector<8x8x4xbf16>
    %82 = vector.shape_cast %81 : vector<8x8x4xbf16> to vector<64x4xbf16>
    %c7 = arith.constant 7 : index
    %c0_65 = arith.constant 0 : index
    %c0_66 = arith.constant 0 : index
    %83 = vector.load %arg4[%c7, %c0_65, %c0_66] : memref<9x4x128xbf16, #tpu.memory_space<vmem>>, vector<1x4x128xbf16>
    %84 = vector.shape_cast %83 : vector<1x4x128xbf16> to vector<4x128xbf16>
    %cst_67 = arith.constant dense<0.000000e+00> : vector<64x128xf32>
    %85 = tpu.matmul %82, %84, %cst_67 {dimension_numbers = #tpu.dot_dimension_numbers<[1], [0], [0], [1], [0, 0, 1, 1], [], []>} : vector<64x4xbf16>, vector<4x128xbf16>, vector<64x128xf32> -> vector<64x128xf32>
    %86 = arith.addf %75, %85 : vector<64x128xf32>
    %c8_i32_68 = arith.constant 8 : i32
    %87 = arith.muli %arg1, %c8_i32_68 : i32
    %88 = tpu.assume_multiple %87, 8 : i32
    %c1_i32_69 = arith.constant 1 : i32
    %89 = arith.addi %88, %c1_i32_69 : i32
    %c0_70 = arith.constant 0 : index
    %c0_71 = arith.constant 0 : index
    %90 = arith.index_cast %89 : i32 to index
    %c1_72 = arith.constant 1 : index
    %c0_73 = arith.constant 0 : index
    %91 = vector.load %arg3[%c0_70, %c0_71, %90, %c1_72, %c0_73] : memref<1x4x9x9x4xbf16, #tpu.memory_space<vmem>>, vector<1x1x8x8x4xbf16>
    %92 = vector.shape_cast %91 : vector<1x1x8x8x4xbf16> to vector<8x8x4xbf16>
    %93 = vector.shape_cast %92 : vector<8x8x4xbf16> to vector<64x4xbf16>
    %c8 = arith.constant 8 : index
    %c0_74 = arith.constant 0 : index
    %c0_75 = arith.constant 0 : index
    %94 = vector.load %arg4[%c8, %c0_74, %c0_75] : memref<9x4x128xbf16, #tpu.memory_space<vmem>>, vector<1x4x128xbf16>
    %95 = vector.shape_cast %94 : vector<1x4x128xbf16> to vector<4x128xbf16>
    %cst_76 = arith.constant dense<0.000000e+00> : vector<64x128xf32>
    %96 = tpu.matmul %93, %95, %cst_76 {dimension_numbers = #tpu.dot_dimension_numbers<[1], [0], [0], [1], [0, 0, 1, 1], [], []>} : vector<64x4xbf16>, vector<4x128xbf16>, vector<64x128xf32> -> vector<64x128xf32>
    %97 = arith.addf %86, %96 : vector<64x128xf32>
    %c0_77 = arith.constant 0 : index
    %c0_78 = arith.constant 0 : index
    %98 = vector.load %arg5[%c0_77, %c0_78] : memref<1x128xf32, #tpu.memory_space<vmem>>, vector<1x128xf32>
    %99 = vector.broadcast %98 : vector<1x128xf32> to vector<64x128xf32>
    %100 = arith.addf %97, %99 : vector<64x128xf32>
    %cst_79 = arith.constant 0.000000e+00 : f32
    %101 = vector.broadcast %cst_79 : f32 to vector<64x128xf32>
    %102 = arith.maximumf %100, %101 : vector<64x128xf32>
    %103 = arith.truncf %102 : vector<64x128xf32> to vector<64x128xbf16>
    %c0_80 = arith.constant 0 : index
    %c0_81 = arith.constant 0 : index
    %c0_82 = arith.constant 0 : index
    %104 = vector.load %arg6[%c0_80, %c0_81, %c0_82] : memref<1x64x128xbf16, #tpu.memory_space<vmem>>, vector<1x64x128xbf16>
    %105 = vector.shape_cast %104 : vector<1x64x128xbf16> to vector<64x128xbf16>
    %106 = vector.shape_cast %103 : vector<64x128xbf16> to vector<1x64x128xbf16>
    tpu.vector_store %arg6[%c0_80, %c0_81, %c0_82], %106 {strides = array<i32>} : memref<1x64x128xbf16, #tpu.memory_space<vmem>>, vector<1x64x128xbf16>,
    return
  }
  func.func @transform_0(%arg0: i32, %arg1: i32, %arg2: i32) -> (i32, i32, i32, i32, i32) {
    %c0_i32 = arith.constant 0 : i32
    %c0_i32_0 = arith.constant 0 : i32
    %c0_i32_1 = arith.constant 0 : i32
    %c0_i32_2 = arith.constant 0 : i32
    %c0_i32_3 = arith.constant 0 : i32
    return %arg0, %c0_i32, %c0_i32_0, %c0_i32_1, %c0_i32_2 : i32, i32, i32, i32, i32
  }
  func.func @transform_1(%arg0: i32, %arg1: i32, %arg2: i32) -> (i32, i32, i32) {
    %c0_i32 = arith.constant 0 : i32
    %c0_i32_0 = arith.constant 0 : i32
    %c0_i32_1 = arith.constant 0 : i32
    return %c0_i32, %c0_i32_0, %arg2 : i32, i32, i32
  }
  func.func @transform_2(%arg0: i32, %arg1: i32, %arg2: i32) -> (i32, i32) {
    %c0_i32 = arith.constant 0 : i32
    %c0_i32_0 = arith.constant 0 : i32
    return %c0_i32, %arg2 : i32, i32
  }
  func.func @transform_3(%arg0: i32, %arg1: i32, %arg2: i32) -> (i32, i32, i32) {
    %c0_i32 = arith.constant 0 : i32
    return %arg0, %arg1, %arg2 : i32, i32, i32
  }
}

</mosaic_0001>

<bundles_post_ra>
// kernel: tpu_custom_call.1
= control target key start
LH: loop header
LB: loop body
LE: loop exit
PB: predicated region body
PF: predicated region fallthrough
CT: control target
= control target key end

     0   :  { %8 = vsyncpa [#allocation3], 0  ;;  %s2312_s0 = inlined_call_operand.vmem [shape: bf16[2,4,9,9,4], index: 0, kind: input, shape index: {}]   ;;  %s2313_s1 = inlined_call_operand.vmem [shape: bf16[9,4,128], index: 1, kind: input, shape index: {}]   ;;  %s2314_s2 = inlined_call_operand.vmem [shape: f32[1,128], index: 2, kind: input, shape index: {}]   ;;  %s2315_s3 = inlined_call_operand.hbm [shape: bf16[2,64,128], index: 3, kind: output, shape index: {}]  }
   0x1   :  { %10 = vsyncpa [#allocation3 + $0x1], 0  ;;  %s1927_s12 = smov 0   ;;  %s1929_s13 = smov 0  }
   0x2   :  { %s1931_s14 = smov 0   ;;  %s1933_s15 = smov 0  }
   0x3   :  { %s1935_s16 = smov 0   ;;  %s1937_s17 = smov 0  }
   0x4 LB: > { %s1489_s18 = sadd.s32 4294967295, %s1903_s17   ;;  %s1490_s19 = sadd.s32 4294967294, %s1903_s17   ;;  %s1903_s17 = sphi %s1937_s17, %s16_s17   ;;  %s1899_s16 = sphi %s1935_s16, %s2324_s16   ;;  %s1895_s15 = sphi %s1933_s15, %s2323_s15   ;;  %s1891_s14 = sphi %s1931_s14, %s2322_s14   ;;  %s1887_s13 = sphi %s1929_s13, %s2321_s13   ;;  %s1883_s12 = sphi %s1927_s12, %s2320_s12  }
   0x5   : > { %s35_s20 = sadd.s32 1, %s1899_s16  ;;  %s124_s21 = sadd.s32 1, %s1891_s14 }
   0x6   : > { %p37_p0 = scmp.ge.s32.totalorder %s35_s20, 2  ;;  %p134_p1 = scmp.ne.s32.totalorder %s1891_s14, %s1887_s13 }
   0x7   : > { %p135_p2 = scmp.eq.s32.totalorder %s1489_s18, 1  ;;  %p140_p3 = scmp.ne.s32.totalorder %s1887_s13, %s1883_s12 }
   0x8   : > { %s2326_s20 = smov (%p37_p0, %s35_s20), 0  ;;  %p141_p5 = scmp.eq.s32.totalorder %s1490_s19, 1 }
   0x9   : > { %p1967_p4 = por %p135_p2, %p134_p1  ;;  %s117_s23 = ssub.s32 %s1899_s16, %s2326_s20 }
   0xa   : > { %p1495_p6 = scmp.ge.s32.totalorder %s1903_s17, 1  ;;  %p122_p7 = scmp.eq.s32.totalorder %s117_s23, 0 }
   0xb   : > { %p1974_p8 = por %p141_p5, %p140_p3  ;;  %p180_p9 = scmp.lt.s32.totalorder %s1903_s17, 3 }
   0xc   : > { %s1980_s25 = scalar_select %p122_p7, %s1891_s14, %s124_s21  }
   0xd   : > { %p181_p10 = pnand %p1495_p6, %p180_p9 }
   0xe   : > { %p211_p11 = scmp.lt.s32.totalorder (!%p181_p10), %s1895_s15, 1  ;;  %s208_s7 = sand.u32 (!%p181_p10), 1, %s1887_s13  }
   0xf   : > { %184 = sbr.rel (%p181_p10) target bundleno = 313 (0x139), region = 32  ;;  %s1496_s8 = sshll.u32 (!%p181_p10), %s208_s7, 5 }
  0x10   : > { %s2248_s9 = scalar_lea.vmem (!%p181_p10), [#allocation2], %s1496_s8  ;;  %s1845_s30 = scalar_lea.hbm (!%p181_p10), %s2315_s3, 64 }
  0x11   : > { %s1359_s21 = sshll.u32 (!%p181_p10), %s2248_s9, 4  ;;  %s1360_s21 = int_to_ptr.vmem [resolvable:$true] %s1359_s21 }
  0x14   : > { %v1506_v0 = vld [vmem:[%s2313_s1 + $0x2] sm:$0x3]  ;;  %vm284_vm0 = vcmask 1041408   ;;  %v1547_v2 = vld [vmem:[%s2313_s1 + $0x4] sm:$0x3]  ;;  %s212_s5 = scalar_select %p211_p11, %s1895_s15, 1 }
  0x15   : > { %v286_v1 = vsel %vm284_vm0, %v1506_v0, 0  ;;  %v1560_v3 = vld [vmem:[%s2313_s1 + $0x6] sm:$0x3]  ;;  %v539_v4 = vsel %vm284_vm0, %v1547_v2, 0  ;;  %v237_v6 = vld [vmem:[%s2313_s1] sm:$0x3] }
  0x16   : > { %1763 = vmatpush.bf16.msra.mxu1 %v286_v1  ;;  %1764 = vmatpush.bf16.msra.mxu2 %v286_v1  ;;  %v624_v5 = vsel %vm284_vm0, %v1560_v3, 0  ;;  %v350_v7 = vsel %vm284_vm0, %v237_v6, 0  ;;  %v1589_v8 = vld [vmem:[%s2313_s1 + $0x8] sm:$0x3]  ;;  %s1766_s10 = smul.u32 288, %s212_s5  ;;  %vm271_vm1 = vcmask 31744  }
  0x17   : > { %1765 = vmatpush.bf16.msra.mxu3 %v286_v1  ;;  %295 = vmatpush.bf16.msra.mxu0 %v286_v1  ;;  %v709_v9 = vsel %vm284_vm0, %v1589_v8, 0  ;;  %v1639_v10 = vld [vmem:[%s2313_s1 + $0xc] sm:$0x3]  ;;  %v1668_v11 = vld [vmem:[%s2313_s1 + $0xe] sm:$0x3] }
  0x18   : > { %s2010_s23 = scalar_lea.vmem %s2312_s0, %s1766_s10  ;;  %v1626_v12 = vld [vmem:[%s2313_s1 + $0xa] sm:$0x3]  ;;  %v989_v24 = vsel %vm284_vm0, %v1639_v10, 0  ;;  %v1074_v28 = vsel %vm284_vm0, %v1668_v11, 0  ;;  %v1705_v38 = vld [vmem:[%s2313_s1 + $0x10] sm:$0x3] }
  0x19   : > { %v1513_v13 = vld [vmem:[%s2010_s23 + $0x58] sm:$0xf]  ;;  %v1720_v14 = vld [vmem:[%s2010_s23 + $0x5c] sm:$0xf0]  ;;  %v1517_v15 = vld [vmem:[%s2010_s23 + $0x68] sm:$0xf] }
  0x1a   : > { %548 = vmatpush.bf16.msrb.mxu2 %v539_v4  ;;  %359 = vmatpush.bf16.msrb.mxu1 %v350_v7  ;;  %v1514_v16 = vor.u32 %v1720_v14, %v1513_v13  ;;  %v1721_v17 = vld [vmem:[%s2010_s23 + $0x6c] sm:$0xf0]  ;;  %v1521_v18 = vld [vmem:[%s2010_s23 + $0x78] sm:$0xf]  ;;  %v1722_v19 = vld [vmem:[%s2010_s23 + $0x7c] sm:$0xf0] }
  0x1b   : > { %633 = vmatpush.bf16.msrb.mxu3 %v624_v5  ;;  %718 = vmatpush.bf16.msrb.mxu0 %v709_v9  ;;  %v1518_v20 = vor.u32 %v1721_v17, %v1517_v15  ;;  %v1522_v21 = vor.u32 %v1722_v19, %v1521_v18  ;;  %v1509_v22 = vld [vmem:[%s2010_s23 + $0x48] sm:$0xf]  ;;  %v1719_v23 = vld [vmem:[%s2010_s23 + $0x4c] sm:$0xf0]  ;;  %v381_v26 = vld [vmem:[%s2010_s23] sm:$0xf] }
  0x1c   : > { %1524 = vmatmul.msk.bf16.vlgmr.msra.gmra.mxu1 %vm271_vm1, %v1514_v16  ;;  %v1510_v25 = vor.u32 %v1719_v23, %v1509_v22  ;;  %v382_v27 = vld [vmem:[%s2010_s23 + $0x4] sm:$0x1]  ;;  %v903_v29 = vsel %vm284_vm0, %v1626_v12, 0  ;;  %v383_v30 = vld [vmem:[%s2010_s23 + $0x8] sm:$0xf]  ;;  %v401_v32 = vshrl.u32 %v381_v26, 16 }
  0x1d   : > { %1525 = vmatmul.msk.bf16.vlgmr.msra.gmra.mxu2 %vm271_vm1, %v1518_v20  ;;  %1526 = vmatmul.msk.bf16.vlgmr.msra.gmra.mxu3 %vm271_vm1, %v1522_v21  ;;  %v384_v31 = vld [vmem:[%s2010_s23 + $0xc] sm:$0x1]  ;;  %v404_v33 = vshll.u32 %v381_v26, 16  ;;  %v410_v34 = vshll.u32 %v382_v27, 16  ;;  %v415_v35 = vshrl.u32 %v383_v30, 16  ;;  %v418_v36 = vshll.u32 %v383_v30, 16 }
  0x1e   : > { %1523 = vmatmul.msk.bf16.vlgmr.msra.gmra.mxu0 %vm271_vm1, %v1510_v25  ;;  %v424_v37 = vshll.u32 %v384_v31, 16  ;;  %998 = vmatpush.bf16.msra.mxu2 %v989_v24  ;;  %vm397_vm2 = vsmask.f32 3328  ;;  %vm398_vm3 = vsmask.f32 7440  ;;  %v403_v39 = vrot.slane %v401_v32, 4 }
  0x1f   : > { %v406_v40 = vrot.slane %v404_v33, 5  ;;  %1083 = vmatpush.bf16.msra.mxu3 %v1074_v28  ;;  %912 = vmatpush.bf16.msra.mxu1 %v903_v29  ;;  %v417_v41 = vrot.slane %v415_v35, 4  ;;  %v420_v42 = vrot.slane %v418_v36, 5  ;;  %v412_v44 = vrot.slane %v410_v34, 5  ;;  %vm2041_vm4 = vmor %vm397_vm2, %vm398_vm3  ;;  %v385_v49 = vld [vmem:[%s2010_s23 + $0x10] sm:$0xf] }
  0x20   : > { %v1268_v45 = vsel %vm284_vm0, %v1705_v38, 0  ;;  %v426_v48 = vrot.slane %v424_v37, 5  ;;  %v387_v50 = vld [vmem:[%s2010_s23 + $0x18] sm:$0xf]  ;;  %v1529_v51 = vld [vmem:[%s2010_s23] sm:$0xf] }
  0x21   : > { %v407_v43 = vor.u32 %v406_v40, %v403_v39  ;;  %v421_v47 = vor.u32 %v420_v42, %v417_v41  ;;  %1277 = vmatpush.bf16.msra.mxu0 %v1268_v45  ;;  %v429_v53 = vshrl.u32 %v385_v49, 16  ;;  %v432_v54 = vshll.u32 %v385_v49, 16  ;;  %v1715_v55 = vld [vmem:[%s2010_s23 + $0x4] sm:$0xf0]  ;;  %v1563_v60 = vld [vmem:[%s2010_s23 + $0x90] sm:$0xf] }
  0x22   : > { %v443_v57 = vshrl.u32 %v387_v50, 16  ;;  %v446_v58 = vshll.u32 %v387_v50, 16  ;;  %v1723_v61 = vld [vmem:[%s2010_s23 + $0x94] sm:$0xf0]  ;;  %v1727_v3 = vld [vmem:[%s2010_s23 + $0xdc] sm:$0xf0]  ;;  %v1530_v9 = vor.u32 %v1715_v55, %v1529_v51 }
  0x23   : > { %v408_v52 = vrot.slane %v407_v43, 4  ;;  %v422_v56 = vrot.slane %v421_v47, 4  ;;  %v431_v62 = vrot.slane %v429_v53, 4  ;;  %v434_v63 = vrot.slane %v432_v54, 5  ;;  %v1592_v2 = vld [vmem:[%s2010_s23 + $0xd8] sm:$0xf] }
  0x24   : > { %v445_v4 = vrot.slane %v443_v57, 4  ;;  %v448_v5 = vrot.slane %v446_v58, 5  ;;  %v386_v7 = vld [vmem:[%s2010_s23 + $0x14] sm:$0x1]  ;;  %v388_v8 = vld [vmem:[%s2010_s23 + $0x1c] sm:$0x1]  ;;  %v1564_v11 = vor.u32 %v1723_v61, %v1563_v60  ;;  %v1593_v12 = vor.u32 %v1727_v3, %v1592_v2 }
  0x25   : > { %v413_v59 = vsel %vm2041_vm4, %v408_v52, %v412_v44  ;;  %v427_v0 = vsel %vm2041_vm4, %v422_v56, %v426_v48  ;;  %v435_v13 = vor.u32 %v434_v63, %v431_v62  ;;  %v438_v14 = vshll.u32 %v386_v7, 16  ;;  %v389_v21 = vld [vmem:[%s2010_s23 + $0x20] sm:$0xf]  ;;  %v391_v22 = vld [vmem:[%s2010_s23 + $0x28] sm:$0xf]  ;;  %s1739_s10 = sshll.u32 %s1895_s15, 5 }
  0x26   : > { %v514_v1 = vunpack.c.l.b16 %v413_v59  ;;  %v515_v6 = vunpack.c.l.b16 %v427_v0  ;;  %v449_v15 = vor.u32 %v448_v5, %v445_v4  ;;  %v452_v16 = vshll.u32 %v388_v8, 16  ;;  %v1533_v29 = vld [vmem:[%s2010_s23 + $0x10] sm:$0xf]  ;;  %v1716_v30 = vld [vmem:[%s2010_s23 + $0x14] sm:$0xf0]  ;;  %s1358_s19 = scalar_lea.hbm %s2315_s3, %s1739_s10  ;;  %s1344_s15 = scalar_lea.sflag [#allocation3], %s208_s7 }
  0x27   : > { %v436_v17 = vrot.slane %v435_v13, 4  ;;  %v440_v18 = vrot.slane %v438_v14, 5  ;;  %v457_v23 = vshrl.u32 %v389_v21, 16  ;;  %v460_v24 = vshll.u32 %v389_v21, 16  ;;  %v1567_v33 = vld [vmem:[%s2010_s23 + $0xa0] sm:$0xf] }
  0x28   : > { %v522_v10 = vpack.c.b16 %v515_v6, %v514_v1  ;;  %v450_v19 = vrot.slane %v449_v15, 4  ;;  %v454_v20 = vrot.slane %v452_v16, 5  ;;  %v471_v27 = vshrl.u32 %v391_v22, 16  ;;  %v1724_v34 = vld [vmem:[%s2010_s23 + $0xa4] sm:$0xf0] }
  0x29   : > { %v441_v25 = vsel %vm2041_vm4, %v436_v17, %v440_v18  ;;  %v474_v28 = vshll.u32 %v391_v22, 16  ;;  %v1596_v35 = vld [vmem:[%s2010_s23 + $0xe8] sm:$0xf]  ;;  %v1728_v36 = vld [vmem:[%s2010_s23 + $0xec] sm:$0xf0]  ;;  %v459_v37 = vrot.slane %v457_v23, 4  ;;  %v1534_v43 = vor.u32 %v1716_v30, %v1533_v29 }
  0x2a   : > { %v455_v26 = vsel %vm2041_vm4, %v450_v19, %v454_v20  ;;  %v516_v31 = vunpack.c.l.b16 %v441_v25  ;;  %v462_v38 = vrot.slane %v460_v24, 5  ;;  %v473_v39 = vrot.slane %v471_v27, 4  ;;  %v390_v41 = vld [vmem:[%s2010_s23 + $0x24] sm:$0x1]  ;;  %v392_v42 = vld [vmem:[%s2010_s23 + $0x2c] sm:$0x1] }
  0x2b   : > { %v517_v32 = vunpack.c.l.b16 %v455_v26  ;;  %v476_v40 = vrot.slane %v474_v28, 5  ;;  %v1568_v45 = vor.u32 %v1724_v34, %v1567_v33  ;;  %v1597_v47 = vor.u32 %v1728_v36, %v1596_v35  ;;  %v393_v52 = vld [vmem:[%s2010_s23 + $0x30] sm:$0xf]  ;;  %v395_v53 = vld [vmem:[%s2010_s23 + $0x38] sm:$0xf] }
  0x2c   : > { %1543 = vmatmul.msk.bf16.vlgmr.msrb.gmra.mxu1 %vm271_vm1, %v1530_v9  ;;  %v463_v48 = vor.u32 %v462_v38, %v459_v37  ;;  %v466_v49 = vshll.u32 %v390_v41, 16  ;;  %v480_v51 = vshll.u32 %v392_v42, 16  ;;  %v485_v58 = vshrl.u32 %v393_v52, 16  ;;  %v394_v4 = vld [vmem:[%s2010_s23 + $0x34] sm:$0x1] }
  0x2d   : > { %1548 = vmatmul.msk.bf16.vlgmr.msrb.gmra.mxu2 %vm271_vm1, %v522_v10  ;;  %1577 = vmatmul.msk.bf16.vlgmr.msrb.gmra.mxu3 %vm271_vm1, %v1564_v11  ;;  %v523_v44 = vpack.c.b16 %v517_v32, %v516_v31  ;;  %v477_v50 = vor.u32 %v476_v40, %v473_v39  ;;  %v488_v59 = vshll.u32 %v393_v52, 16  ;;  %v499_v60 = vshrl.u32 %v395_v53, 16  ;;  %v396_v5 = vld [vmem:[%s2010_s23 + $0x3c] sm:$0x1]  ;;  %v1537_v6 = vld [vmem:[%s2010_s23 + $0x20] sm:$0xf] }
  0x2e   : > { %1606 = vmatmul.msk.bf16.vlgmr.msrb.gmra.mxu0 %vm271_vm1, %v1593_v12  ;;  %v464_v54 = vrot.slane %v463_v48, 4  ;;  %v468_v55 = vrot.slane %v466_v49, 5  ;;  %v482_v57 = vrot.slane %v480_v51, 5  ;;  %v502_v61 = vshll.u32 %v395_v53, 16  ;;  %v1717_v7 = vld [vmem:[%s2010_s23 + $0x24] sm:$0xf0] }
  0x2f   : > { %v478_v56 = vrot.slane %v477_v50, 4  ;;  %v487_v0 = vrot.slane %v485_v58, 4  ;;  %v490_v1 = vrot.slane %v488_v59, 5  ;;  %v501_v2 = vrot.slane %v499_v60, 4  ;;  %v1571_v10 = vld [vmem:[%s2010_s23 + $0xb0] sm:$0xf] }
  0x30   : > { %v469_v62 = vsel %vm2041_vm4, %v464_v54, %v468_v55  ;;  %v504_v3 = vrot.slane %v502_v61, 5  ;;  %v1725_v11 = vld [vmem:[%s2010_s23 + $0xb4] sm:$0xf0]  ;;  %v1729_v13 = vld [vmem:[%s2010_s23 + $0xfc] sm:$0xf0]  ;;  %v494_v15 = vshll.u32 %v394_v4, 16  ;;  %v1538_v18 = vor.u32 %v1717_v7, %v1537_v6 }
  0x31   : > { %v483_v63 = vsel %vm2041_vm4, %v478_v56, %v482_v57  ;;  %v518_v8 = vunpack.c.l.b16 %v469_v62  ;;  %v1600_v12 = vld [vmem:[%s2010_s23 + $0xf8] sm:$0xf]  ;;  %v491_v14 = vor.u32 %v490_v1, %v487_v0  ;;  %v508_v17 = vshll.u32 %v396_v5, 16  ;;  %v1610_v26 = vld [vmem:[%s2010_s23 + $0x90] sm:$0xf] }
  0x32   : > { %v519_v9 = vunpack.c.l.b16 %v483_v63  ;;  %v505_v16 = vor.u32 %v504_v3, %v501_v2  ;;  %v1572_v20 = vor.u32 %v1725_v11, %v1571_v10  ;;  %v1601_v21 = vor.u32 %v1729_v13, %v1600_v12  ;;  %v1612_v27 = vld [vmem:[%s2010_s23 + $0x98] sm:$0xf]  ;;  %v1689_v28 = vld [vmem:[%s2010_s23 + $0x8] sm:$0xf]  ;;  %v1691_v29 = vld [vmem:[%s2010_s23 + $0x10] sm:$0xf] }
  0x33   : > { %v492_v22 = vrot.slane %v491_v14, 4  ;;  %v496_v23 = vrot.slane %v494_v15, 5  ;;  %v510_v25 = vrot.slane %v508_v17, 5  ;;  %v765_v32 = vshrl.u32 %v1610_v26, 16  ;;  %v1541_v40 = vld [vmem:[%s2010_s23 + $0x30] sm:$0xf] }
  0x34   : > { %v524_v19 = vpack.c.b16 %v519_v9, %v518_v8  ;;  %v506_v24 = vrot.slane %v505_v16, 4  ;;  %v768_v33 = vshll.u32 %v1610_v26, 16  ;;  %v779_v34 = vshrl.u32 %v1612_v27, 16  ;;  %v1718_v41 = vld [vmem:[%s2010_s23 + $0x34] sm:$0xf0] }
  0x35   : > { %v497_v30 = vsel %vm2041_vm4, %v492_v22, %v496_v23  ;;  %v782_v35 = vshll.u32 %v1612_v27, 16  ;;  %v1130_v36 = vshrl.u32 %v1689_v28, 16  ;;  %v1133_v37 = vshll.u32 %v1689_v28, 16  ;;  %v1613_v52 = vld [vmem:[%s2010_s23 + $0x9c] sm:$0x1] }
  0x36   : > { %v511_v31 = vsel %vm2041_vm4, %v506_v24, %v510_v25  ;;  %v1144_v38 = vshrl.u32 %v1691_v29, 16  ;;  %v1147_v39 = vshll.u32 %v1691_v29, 16  ;;  %v520_v42 = vunpack.c.l.b16 %v497_v30  ;;  %v1690_v57 = vld [vmem:[%s2010_s23 + $0xc] sm:$0x1]  ;;  %v1692_v58 = vld [vmem:[%s2010_s23 + $0x14] sm:$0x1] }
  0x37   : > { %v767_v48 = vrot.slane %v765_v32, 4  ;;  %v770_v49 = vrot.slane %v768_v33, 5  ;;  %v781_v50 = vrot.slane %v779_v34, 4  ;;  %v784_v51 = vrot.slane %v782_v35, 5  ;;  %v1604_v62 = vld [vmem:[%s2010_s23 + $0x108] sm:$0xf] }
  0x38   : > { %v1132_v53 = vrot.slane %v1130_v36, 4  ;;  %v1135_v54 = vrot.slane %v1133_v37, 5  ;;  %v1146_v55 = vrot.slane %v1144_v38, 4  ;;  %v1149_v56 = vrot.slane %v1147_v39, 5  ;;  %v1730_v63 = vld [vmem:[%s2010_s23 + $0x10c] sm:$0xf0] }
  0x39   : > { %v1542_v59 = vor.u32 %v1718_v41, %v1541_v40  ;;  %v771_v0 = vor.u32 %v770_v49, %v767_v48  ;;  %v785_v2 = vor.u32 %v784_v51, %v781_v50  ;;  %v788_v3 = vshll.u32 %v1613_v52, 16  ;;  %v1614_v9 = vld [vmem:[%s2010_s23 + $0xa0] sm:$0xf]  ;;  %v1616_v10 = vld [vmem:[%s2010_s23 + $0xa8] sm:$0xf] }
  0x3a   : > { %v1136_v4 = vor.u32 %v1135_v54, %v1132_v53  ;;  %v1139_v5 = vshll.u32 %v1690_v57, 16  ;;  %v1150_v6 = vor.u32 %v1149_v56, %v1146_v55  ;;  %v1153_v7 = vshll.u32 %v1692_v58, 16  ;;  %v1693_v23 = vld [vmem:[%s2010_s23 + $0x18] sm:$0xf]  ;;  %v1695_v24 = vld [vmem:[%s2010_s23 + $0x20] sm:$0xf] }
  0x3b   : > { %v1605_v8 = vor.u32 %v1730_v63, %v1604_v62  ;;  %v772_v11 = vrot.slane %v771_v0, 4  ;;  %v786_v13 = vrot.slane %v785_v2, 4  ;;  %v790_v14 = vrot.slane %v788_v3, 5  ;;  %v1615_v29 = vld [vmem:[%s2010_s23 + $0xa4] sm:$0x1] }
  0x3c   : > { %1544 = vmatmul.msk.bf16.gmra.mxu1 %vm271_vm1, %v1534_v43  ;;  %v521_v43 = vunpack.c.l.b16 %v511_v31  ;;  %v1137_v15 = vrot.slane %v1136_v4, 4  ;;  %v1141_v16 = vrot.slane %v1139_v5, 5  ;;  %v1151_v17 = vrot.slane %v1150_v6, 4  ;;  %v1617_v34 = vld [vmem:[%s2010_s23 + $0xac] sm:$0x1] }
  0x3d   : > { %1549 = vmatmul.msk.bf16.gmra.mxu2 %vm271_vm1, %v523_v44  ;;  %1578 = vmatmul.msk.bf16.gmra.mxu3 %vm271_vm1, %v1568_v45  ;;  %v1575_v44 = vld [vmem:[%s2010_s23 + $0xc0] sm:$0xf]  ;;  %v1726_v45 = vld [vmem:[%s2010_s23 + $0xc4] sm:$0xf0]  ;;  %v810_v22 = vshll.u32 %v1616_v10, 16  ;;  %v791_v26 = vsel %vm2041_vm4, %v786_v13, %v790_v14  ;;  %v1158_v35 = vshrl.u32 %v1693_v23, 16 }
  0x3e   : > { %1607 = vmatmul.msk.bf16.gmra.mxu0 %vm271_vm1, %v1597_v47  ;;  %v1611_v47 = vld [vmem:[%s2010_s23 + $0x94] sm:$0x1]  ;;  %v525_v60 = vpack.c.b16 %v521_v43, %v520_v42  ;;  %v1576_v61 = vor.u32 %v1726_v45, %v1575_v44  ;;  %v1142_v27 = vsel %vm2041_vm4, %v1137_v15, %v1141_v16  ;;  %v1161_v36 = vshll.u32 %v1693_v23, 16  ;;  %v1642_v41 = vld [vmem:[%s2010_s23 + $0x8] sm:$0xf] }
  0x3f   : > { %v774_v1 = vshll.u32 %v1611_v47, 16  ;;  %v812_v33 = vrot.slane %v810_v22, 5  ;;  %v1172_v37 = vshrl.u32 %v1695_v24, 16  ;;  %v1175_v38 = vshll.u32 %v1695_v24, 16  ;;  %v1731_v42 = vld [vmem:[%s2010_s23 + $0xc] sm:$0xf0] }
  0x40   : > { %v879_v40 = vunpack.c.l.b16 %v791_v26  ;;  %v1243_v43 = vunpack.c.l.b16 %v1142_v27  ;;  %v1671_v45 = vld [vmem:[%s2010_s23 + $0x50] sm:$0xf]  ;;  %v1735_v47 = vld [vmem:[%s2010_s23 + $0x54] sm:$0xf0]  ;;  %v802_v49 = vshll.u32 %v1615_v29, 16  ;;  %v816_v51 = vshll.u32 %v1617_v34, 16 }
  0x41   : > { %v776_v12 = vrot.slane %v774_v1, 5  ;;  %v1160_v52 = vrot.slane %v1158_v35, 4  ;;  %v1163_v53 = vrot.slane %v1161_v36, 5  ;;  %v1174_v54 = vrot.slane %v1172_v37, 4  ;;  %v1694_v57 = vld [vmem:[%s2010_s23 + $0x1c] sm:$0x1] }
  0x42   : > { %v1177_v55 = vrot.slane %v1175_v38, 5  ;;  %v1696_v58 = vld [vmem:[%s2010_s23 + $0x24] sm:$0x1]  ;;  %v804_v63 = vrot.slane %v802_v49, 5  ;;  %v818_v1 = vrot.slane %v816_v51, 5  ;;  %v1167_v3 = vshll.u32 %v1694_v57, 16 }
  0x43   : > { %v777_v25 = vsel %vm2041_vm4, %v772_v11, %v776_v12  ;;  %v1164_v2 = vor.u32 %v1163_v53, %v1160_v52  ;;  %v1181_v5 = vshll.u32 %v1696_v58, 16  ;;  %v1618_v6 = vld [vmem:[%s2010_s23 + $0xb0] sm:$0xf]  ;;  %v1732_v29 = vld [vmem:[%s2010_s23 + $0x1c] sm:$0xf0] }
  0x44   : > { %v878_v39 = vunpack.c.l.b16 %v777_v25  ;;  %v1178_v4 = vor.u32 %v1177_v55, %v1174_v54  ;;  %v1169_v12 = vrot.slane %v1167_v3, 5  ;;  %v1699_v15 = vld [vmem:[%s2010_s23 + $0x30] sm:$0xf]  ;;  %v821_v16 = vshrl.u32 %v1618_v6, 16  ;;  %v1619_v35 = vld [vmem:[%s2010_s23 + $0xb4] sm:$0x1] }
  0x45   : > { %v1165_v11 = vrot.slane %v1164_v2, 4  ;;  %v1183_v14 = vrot.slane %v1181_v5, 5  ;;  %v1200_v22 = vshrl.u32 %v1699_v15, 16  ;;  %v1203_v23 = vshll.u32 %v1699_v15, 16  ;;  %v1621_v36 = vld [vmem:[%s2010_s23 + $0xbc] sm:$0x1] }
  0x46   : > { %v886_v56 = vpack.c.b16 %v879_v40, %v878_v39  ;;  %v1179_v13 = vrot.slane %v1178_v4, 4  ;;  %v1736_v39 = vld [vmem:[%s2010_s23 + $0x64] sm:$0xf0]  ;;  %v830_v49 = vshll.u32 %v1619_v35, 16  ;;  %v844_v51 = vshll.u32 %v1621_v36, 16 }
  0x47   : > { %v1170_v26 = vsel %vm2041_vm4, %v1165_v11, %v1169_v12  ;;  %v1622_v3 = vld [vmem:[%s2010_s23 + $0xc0] sm:$0xf]  ;;  %v1624_v4 = vld [vmem:[%s2010_s23 + $0xc8] sm:$0xf] }
  0x48   : > { %v1184_v27 = vsel %vm2041_vm4, %v1179_v13, %v1183_v14  ;;  %v1245_v40 = vunpack.c.l.b16 %v1170_v26  ;;  %v863_v11 = vshrl.u32 %v1624_v4, 16  ;;  %v866_v12 = vshll.u32 %v1624_v4, 16  ;;  %v1683_v4 = vld [vmem:[%s2010_s23 + $0x80] sm:$0xf] }
  0x4c   : > { %1545 = vmatmul.msk.bf16.gmra.mxu1 %vm271_vm1, %v1538_v18  ;;  %v1155_v18 = vrot.slane %v1153_v7, 5  ;;  %v1620_v7 = vld [vmem:[%s2010_s23 + $0xb8] sm:$0xf] }
  0x4d   : > { %1550 = vmatmul.msk.bf16.gmra.mxu2 %vm271_vm1, %v524_v19  ;;  %1579 = vmatmul.msk.bf16.gmra.mxu3 %vm271_vm1, %v1572_v20  ;;  %v793_v19 = vshrl.u32 %v1614_v9, 16  ;;  %v796_v20 = vshll.u32 %v1614_v9, 16 }
  0x4e   : > { %1608 = vmatmul.msk.bf16.gmra.mxu0 %vm271_vm1, %v1601_v21  ;;  %v807_v21 = vshrl.u32 %v1616_v10, 16  ;;  %v1156_v28 = vsel %vm2041_vm4, %v1151_v17, %v1155_v18  ;;  %v1697_v10 = vld [vmem:[%s2010_s23 + $0x28] sm:$0xf]  ;;  %v824_v17 = vshll.u32 %v1618_v6, 16  ;;  %v835_v18 = vshrl.u32 %v1620_v7, 16 }
  0x4f   : > { %v795_v30 = vrot.slane %v793_v19, 4  ;;  %v798_v31 = vrot.slane %v796_v20, 5  ;;  %v1244_v44 = vunpack.c.l.b16 %v1156_v28  ;;  %v838_v19 = vshll.u32 %v1620_v7, 16  ;;  %v1646_v28 = vld [vmem:[%s2010_s23 + $0x18] sm:$0xf] }
  0x50   : > { %v809_v32 = vrot.slane %v807_v21, 4  ;;  %v1186_v20 = vshrl.u32 %v1697_v10, 16  ;;  %v1189_v21 = vshll.u32 %v1697_v10, 16  ;;  %v1647_v52 = vor.u32 %v1732_v29, %v1646_v28  ;;  %v1701_v7 = vld [vmem:[%s2010_s23 + $0x38] sm:$0xf] }
  0x51   : > { %v799_v48 = vor.u32 %v798_v31, %v795_v30  ;;  %v1675_v30 = vld [vmem:[%s2010_s23 + $0x60] sm:$0xf]  ;;  %v823_v31 = vrot.slane %v821_v16, 4  ;;  %v840_v34 = vrot.slane %v838_v19, 5  ;;  %v852_v10 = vshll.u32 %v1622_v3, 16 }
  0x52   : > { %v813_v50 = vor.u32 %v812_v33, %v809_v32  ;;  %v826_v32 = vrot.slane %v824_v17, 5  ;;  %v837_v33 = vrot.slane %v835_v18, 4  ;;  %v1188_v37 = vrot.slane %v1186_v20, 4 }
  0x53   : > { %v800_v62 = vrot.slane %v799_v48, 4  ;;  %v1191_v38 = vrot.slane %v1189_v21, 5  ;;  %v1676_v53 = vor.u32 %v1736_v39, %v1675_v30  ;;  %v1214_v15 = vshrl.u32 %v1701_v7, 16  ;;  %v1650_v21 = vld [vmem:[%s2010_s23 + $0x28] sm:$0xf] }
  0x54   : > { %v814_v0 = vrot.slane %v813_v50, 4  ;;  %v827_v48 = vor.u32 %v826_v32, %v823_v31  ;;  %v841_v50 = vor.u32 %v840_v34, %v837_v33  ;;  %v1217_v16 = vshll.u32 %v1701_v7, 16  ;;  %v1623_v31 = vld [vmem:[%s2010_s23 + $0xc4] sm:$0x1]  ;;  %v1625_v32 = vld [vmem:[%s2010_s23 + $0xcc] sm:$0x1] }
  0x55   : > { %v1192_v54 = vor.u32 %v1191_v38, %v1188_v37  ;;  %v854_v26 = vrot.slane %v852_v10, 5  ;;  %v868_v28 = vrot.slane %v866_v12, 5  ;;  %v1216_v33 = vrot.slane %v1214_v15, 4 }
  0x56   : > { %v819_v9 = vsel %vm2041_vm4, %v814_v0, %v818_v1  ;;  %v1219_v34 = vrot.slane %v1217_v16, 5 }
  0x57   : > { %v881_v25 = vunpack.c.l.b16 %v819_v9  ;;  %v849_v9 = vshrl.u32 %v1622_v3, 16  ;;  %v1734_v3 = vld [vmem:[%s2010_s23 + $0x3c] sm:$0xf0] }
  0x5c   : > { %1546 = vmatmul.msk.bf16.gmra.mxu1 %vm271_vm1, %v1542_v59  ;;  %v1643_v59 = vor.u32 %v1731_v42, %v1642_v41  ;;  %v1246_v41 = vunpack.c.l.b16 %v1184_v27  ;;  %v1698_v42 = vld [vmem:[%s2010_s23 + $0x2c] sm:$0x1]  ;;  %v865_v27 = vrot.slane %v863_v11, 4 }
  0x5d   : > { %1551 = vmatmul.msk.bf16.gmra.mxu2 %vm271_vm1, %v525_v60  ;;  %1580 = vmatmul.msk.bf16.gmra.mxu3 %vm271_vm1, %v1576_v61  ;;  %v1672_v60 = vor.u32 %v1735_v47, %v1671_v45  ;;  %v1251_v61 = vpack.c.b16 %v1244_v44, %v1243_v43  ;;  %v1202_v43 = vrot.slane %v1200_v22, 4  ;;  %v1205_v44 = vrot.slane %v1203_v23, 5  ;;  %v1700_v47 = vld [vmem:[%s2010_s23 + $0x34] sm:$0x1]  ;;  %v1733_v22 = vld [vmem:[%s2010_s23 + $0x2c] sm:$0xf0] }
  0x5e   : > { %1609 = vmatmul.msk.bf16.gmra.mxu0 %vm271_vm1, %v1605_v8  ;;  %v805_v8 = vsel %vm2041_vm4, %v800_v62, %v804_v63  ;;  %v1195_v55 = vshll.u32 %v1698_v42, 16  ;;  %v1209_v58 = vshll.u32 %v1700_v47, 16  ;;  %v846_v62 = vrot.slane %v844_v51, 5  ;;  %v1679_v23 = vld [vmem:[%s2010_s23 + $0x70] sm:$0xf] }
  0x5f   : > { %v880_v24 = vunpack.c.l.b16 %v805_v8  ;;  %v1206_v57 = vor.u32 %v1205_v44, %v1202_v43  ;;  %v1193_v63 = vrot.slane %v1192_v54, 4  ;;  %v1703_v8 = vld [vmem:[%s2010_s23 + $0x40] sm:$0xf]  ;;  %v1651_v38 = vor.u32 %v1733_v22, %v1650_v21 }
  0x60   : > { %v1197_v0 = vrot.slane %v1195_v55, 5  ;;  %v1211_v2 = vrot.slane %v1209_v58, 5  ;;  %v1228_v17 = vshrl.u32 %v1703_v8, 16  ;;  %v1231_v18 = vshll.u32 %v1703_v8, 16 }
  0x61   : > { %v887_v45 = vpack.c.b16 %v881_v25, %v880_v24  ;;  %v1207_v1 = vrot.slane %v1206_v57, 4  ;;  %v1737_v24 = vld [vmem:[%s2010_s23 + $0x74] sm:$0xf0]  ;;  %v851_v25 = vrot.slane %v849_v9, 4  ;;  %v858_v43 = vshll.u32 %v1623_v31, 16 }
  0x62   : > { %v1198_v13 = vsel %vm2041_vm4, %v1193_v63, %v1197_v0  ;;  %v1230_v35 = vrot.slane %v1228_v17, 4  ;;  %v1233_v36 = vrot.slane %v1231_v18, 5  ;;  %v1680_v39 = vor.u32 %v1737_v24, %v1679_v23 }
  0x63   : > { %v1212_v14 = vsel %vm2041_vm4, %v1207_v1, %v1211_v2  ;;  %v1247_v29 = vunpack.c.l.b16 %v1198_v13  ;;  %v855_v42 = vor.u32 %v854_v26, %v851_v25  ;;  %v869_v44 = vor.u32 %v868_v28, %v865_v27  ;;  %v1654_v2 = vld [vmem:[%s2010_s23 + $0x38] sm:$0xf] }
  0x64   : > { %v1248_v30 = vunpack.c.l.b16 %v1212_v14  ;;  %v1655_v10 = vor.u32 %v1734_v3, %v1654_v2 }
  0x65   : > { %v870_v54 = vrot.slane %v869_v44, 4 }
  0x66   : > { %v1253_v47 = vpack.c.b16 %v1248_v30, %v1247_v29 }
  0x6c   : > { %1627 = vmatmul.msk.bf16.vlgmr.msra.gmra.mxu1 %vm271_vm1, %v886_v56  ;;  %v1252_v56 = vpack.c.b16 %v1246_v41, %v1245_v40  ;;  %v1702_v40 = vld [vmem:[%s2010_s23 + $0x3c] sm:$0x1]  ;;  %v1704_v41 = vld [vmem:[%s2010_s23 + $0x44] sm:$0x1] }
  0x6d   : > { %1656 = vmatmul.msk.bf16.vlgmr.msra.gmra.mxu2 %vm271_vm1, %v1643_v59  ;;  %1685 = vmatmul.msk.bf16.vlgmr.msra.gmra.mxu3 %vm271_vm1, %v1672_v60  ;;  %v828_v59 = vrot.slane %v827_v48, 4  ;;  %v832_v60 = vrot.slane %v830_v49, 5  ;;  %v1220_v48 = vor.u32 %v1219_v34, %v1216_v33  ;;  %v1223_v49 = vshll.u32 %v1702_v40, 16 }
  0x6e   : > { %1706 = vmatmul.msk.bf16.vlgmr.msra.gmra.mxu0 %vm271_vm1, %v1251_v61  ;;  %v842_v61 = vrot.slane %v841_v50, 4  ;;  %v1234_v50 = vor.u32 %v1233_v36, %v1230_v35  ;;  %v1237_v51 = vshll.u32 %v1704_v41, 16 }
  0x6f   : > { %v833_v5 = vsel %vm2041_vm4, %v828_v59, %v832_v60  ;;  %v1225_v57 = vrot.slane %v1223_v49, 5 }
  0x70   : > { %v847_v6 = vsel %vm2041_vm4, %v842_v61, %v846_v62  ;;  %v882_v19 = vunpack.c.l.b16 %v833_v5  ;;  %v1235_v58 = vrot.slane %v1234_v50, 4  ;;  %v1239_v59 = vrot.slane %v1237_v51, 5  ;;  %v1738_v5 = vld [vmem:[%s2010_s23 + $0x84] sm:$0xf0]  ;;  %s1361_s23 = sshll.u32 %s1358_s19, 4  ;;  %s1362_s23 = int_to_ptr.hbm [resolvable:$true] %s1361_s23 }
  0x71   : > { %v883_v20 = vunpack.c.l.b16 %v847_v6  ;;  %v1684_v11 = vor.u32 %v1738_v5, %v1683_v4  ;;  %s1839_s26 = sshra.s32 %s1362_s23, 4  ;;  %s1840_s26 = int_to_ptr.hbm [resolvable:$true] %s1839_s26 }
  0x72   : > { %v1240_v63 = vsel %vm2041_vm4, %v1235_v58, %v1239_v59  ;;  %s1841_s27 = scalar_lea.hbm %s1840_s26, 32  ;;  %p1846_p1 = scmp.lt.s32.totalorder %s1840_s26, %s2315_s3 }
  0x73   : > { %v888_v37 = vpack.c.b16 %v883_v20, %v882_v19  ;;  %v1250_v7 = vunpack.c.l.b16 %v1240_v63  ;;  %p1842_p12 = scmp.ne.s32.totalorder %s1840_s26, %s1841_s27  ;;  %p1847_p2 = scmp.lt.s32.totalorder %s1845_s30, %s1841_s27 }
  0x75   : > { %p1843_p13 = pnand %p1842_p12, %p1967_p4  ;;  %p1848_p3 = por %p1847_p2, %p1846_p1 }
  0x77   : > { %p1844_p0 = pneg %p1843_p13 }
  0x79   : > { %p1849_p5 = pnand %p1848_p3, %p1844_p0 }
  0x7c   : > { %1628 = vmatmul.msk.bf16.gmra.mxu1 %vm271_vm1, %v887_v45  ;;  %v872_v45 = vshll.u32 %v1625_v32, 16 }
  0x7d   : > { %1657 = vmatmul.msk.bf16.gmra.mxu2 %vm271_vm1, %v1647_v52  ;;  %1686 = vmatmul.msk.bf16.gmra.mxu3 %vm271_vm1, %v1676_v53  ;;  %v856_v52 = vrot.slane %v855_v42, 4  ;;  %v860_v53 = vrot.slane %v858_v43, 5 }
  0x7e   : > { %1707 = vmatmul.msk.bf16.gmra.mxu0 %vm271_vm1, %v1252_v56  ;;  %v874_v55 = vrot.slane %v872_v45, 5  ;;  %v1221_v56 = vrot.slane %v1220_v48, 4 }
  0x7f   : > { %v861_v60 = vsel %vm2041_vm4, %v856_v52, %v860_v53 }
  0x80   : > { %v875_v61 = vsel %vm2041_vm4, %v870_v54, %v874_v55  ;;  %v1226_v62 = vsel %vm2041_vm4, %v1221_v56, %v1225_v57  ;;  %v884_v0 = vunpack.c.l.b16 %v861_v60 }
  0x81   : > { %v885_v1 = vunpack.c.l.b16 %v875_v61  ;;  %v1249_v6 = vunpack.c.l.b16 %v1226_v62 }
  0x83   : > { %v889_v8 = vpack.c.b16 %v885_v1, %v884_v0  ;;  %v1254_v12 = vpack.c.b16 %v1250_v7, %v1249_v6 }
  0x8c   : > { %1629 = vmatmul.msk.bf16.gmra.mxu1 %vm271_vm1, %v888_v37 }
  0x8d   : > { %1658 = vmatmul.msk.bf16.gmra.mxu2 %vm271_vm1, %v1651_v38  ;;  %1687 = vmatmul.msk.bf16.gmra.mxu3 %vm271_vm1, %v1680_v39 }
  0x8e   : > { %1708 = vmatmul.msk.bf16.gmra.mxu0 %vm271_vm1, %v1253_v47 }
  0x99   : > { %v302_v9 = vpop.f32.mrf.mxu1 }
  0x9b   : > { %v297_v13 = vpop.f32.mrf.mxu0 }
  0x9c   : > { %1630 = vmatmul.msk.bf16.gmra.mxu1 %vm271_vm1, %v889_v8 }
  0x9d   : > { %1659 = vmatmul.msk.bf16.gmra.mxu2 %vm271_vm1, %v1655_v10  ;;  %1688 = vmatmul.msk.bf16.gmra.mxu3 %vm271_vm1, %v1684_v11 }
  0x9e   : > { %1709 = vmatmul.msk.bf16.gmra.mxu0 %vm271_vm1, %v1254_v12 }
  0xa0   : > { %v307_v46 = vpop.f32.mrf.mxu2  ;;  %v312_v14 = vpop.f32.mrf.mxu3 }
  0xa1   : > { %v2209_v15 = vpop.f32.mrf.mxu1 }
  0xa3   : > { %v299_v16 = vpop.f32.mrf.mxu0 }
  0xa8   : > { %v2211_v17 = vpop.f32.mrf.mxu2  ;;  %v2213_v18 = vpop.f32.mrf.mxu3 }
  0xa9   : > { %v361_v19 = vpop.f32.mrf.mxu1 }
  0xaa   : > { %v362_v20 = vadd.f32 %v361_v19, %v297_v13 }
  0xab   : > { %v720_v21 = vpop.f32.mrf.mxu0 }
  0xb0   : > { %v550_v22 = vpop.f32.mrf.mxu2  ;;  %v635_v23 = vpop.f32.mrf.mxu3 }
  0xb1   : > { %v570_v24 = vadd.f32 %v550_v22, %v362_v20  ;;  %v363_v25 = vpop.f32.mrf.mxu1 }
  0xb2   : > { %v364_v5 = vadd.f32 %v363_v25, %v299_v16  ;;  %v2240_v16 = vld [vmem:[%s2314_s2] ss:$0 sm:$0xff] }
  0xb3   : > { %v655_v26 = vadd.f32 %v635_v23, %v570_v24  ;;  %v722_v27 = vpop.f32.mrf.mxu0 }
  0xb5   : > { %v740_v28 = vadd.f32 %v720_v21, %v655_v26 }
  0xb8   : > { %v552_v29 = vpop.f32.mrf.mxu2  ;;  %v637_v30 = vpop.f32.mrf.mxu3 }
  0xb9   : > { %v366_v31 = vpop.f32.mrf.mxu1  ;;  %v571_v7 = vadd.f32 %v552_v29, %v364_v5 }
  0xba   : > { %v367_v32 = vadd.f32 %v366_v31, %v302_v9 }
  0xbb   : > { %v725_v33 = vpop.f32.mrf.mxu0  ;;  %v656_v11 = vadd.f32 %v637_v30, %v571_v7 }
  0xbd   : > { %v741_v19 = vadd.f32 %v722_v27, %v656_v11 }
  0xc0   : > { %v555_v34 = vpop.f32.mrf.mxu2  ;;  %v640_v35 = vpop.f32.mrf.mxu3 }
  0xc1   : > { %v572_v36 = vadd.f32 %v555_v34, %v367_v32  ;;  %v368_v37 = vpop.f32.mrf.mxu1 }
  0xc2   : > { %v369_v26 = vadd.f32 %v368_v37, %v2209_v15 }
  0xc3   : > { %v657_v38 = vadd.f32 %v640_v35, %v572_v36  ;;  %v2215_v39 = vpop.f32.mrf.mxu0 }
  0xc5   : > { %v742_v40 = vadd.f32 %v725_v33, %v657_v38 }
  0xc8   : > { %v557_v41 = vpop.f32.mrf.mxu2  ;;  %v642_v42 = vpop.f32.mrf.mxu3 }
  0xc9   : > { %v371_v43 = vpop.f32.mrf.mxu1  ;;  %v573_v30 = vadd.f32 %v557_v41, %v369_v26 }
  0xca   : > { %v372_v44 = vadd.f32 %v371_v43, %v307_v46 }
  0xcb   : > { %v730_v45 = vpop.f32.mrf.mxu0  ;;  %v658_v36 = vadd.f32 %v642_v42, %v573_v30 }
  0xd0   : > { %v560_v47 = vpop.f32.mrf.mxu2  ;;  %v645_v48 = vpop.f32.mrf.mxu3 }
  0xd1   : > { %v574_v49 = vadd.f32 %v560_v47, %v372_v44  ;;  %v2217_v50 = vpop.f32.mrf.mxu1  ;;  %v743_v47 = vadd.f32 %v2215_v39, %v658_v36 }
  0xd2   : > { %v374_v42 = vadd.f32 %v2217_v50, %v2211_v17 }
  0xd3   : > { %v659_v51 = vadd.f32 %v645_v48, %v574_v49  ;;  %v2219_v52 = vpop.f32.mrf.mxu0 }
  0xd5   : > { %v2221_v53 = vadd.f32 %v730_v45, %v659_v51 }
  0xd8   : > { %v2223_v54 = vpop.f32.mrf.mxu2  ;;  %v2225_v55 = vpop.f32.mrf.mxu3 }
  0xd9   : > { %v376_v56 = vpop.f32.mrf.mxu1 }
  0xda   : > { %v377_v57 = vadd.f32 %v376_v56, %v312_v14 }
  0xdb   : > { %v735_v58 = vpop.f32.mrf.mxu0 }
  0xe0   : > { %v565_v59 = vpop.f32.mrf.mxu2  ;;  %v650_v60 = vpop.f32.mrf.mxu3 }
  0xe1   : > { %v576_v61 = vadd.f32 %v565_v59, %v377_v57  ;;  %v2227_v62 = vpop.f32.mrf.mxu1  ;;  %v575_v59 = vadd.f32 %v2223_v54, %v374_v42 }
  0xe3   : > { %v661_v63 = vadd.f32 %v650_v60, %v576_v61  ;;  %v2229_v0 = vpop.f32.mrf.mxu0  ;;  %v660_v7 = vadd.f32 %v2225_v55, %v575_v59 }
  0xe5   : > { %v2231_v1 = vadd.f32 %v735_v58, %v661_v63  ;;  %v745_v54 = vadd.f32 %v2219_v52, %v660_v7 }
  0xe8   : > { %v2233_v2 = vpop.f32.mrf.mxu2  ;;  %v2235_v3 = vpop.f32.mrf.mxu3 }
  0xe9   : > { %v914_v4 = vpop.f32.mrf.mxu1 }
  0xea   : > { %v934_v8 = vadd.f32 %v914_v4, %v740_v28 }
  0xeb   : > { %v1279_v6 = vpop.f32.mrf.mxu0 }
  0xf0   : > { %v1000_v9 = vpop.f32.mrf.mxu2  ;;  %v1085_v10 = vpop.f32.mrf.mxu3 }
  0xf1   : > { %v1020_v12 = vadd.f32 %v1000_v9, %v934_v8  ;;  %v916_v13 = vpop.f32.mrf.mxu1 }
  0xf2   : > { %v935_v20 = vadd.f32 %v916_v13, %v741_v19 }
  0xf3   : > { %v1281_v46 = vpop.f32.mrf.mxu0  ;;  %v1105_v14 = vadd.f32 %v1085_v10, %v1020_v12 }
  0xf5   : > { %v1299_v23 = vadd.f32 %v1279_v6, %v1105_v14 }
  0xf7   : > { %v1311_v31 = vadd.f32 %v2240_v16, %v1299_v23 }
  0xf8   : > { %v1002_v21 = vpop.f32.mrf.mxu2  ;;  %v1087_v22 = vpop.f32.mrf.mxu3 }
  0xf9   : > { %v1021_v24 = vadd.f32 %v1002_v21, %v935_v20  ;;  %v919_v25 = vpop.f32.mrf.mxu1  ;;  %v1319_v38 = vmax.f32 %v1311_v31, 0.0  ;;  %v379_v21 = vadd.f32 %v2227_v62, %v2213_v18 }
  0xfa   : > { %v936_v33 = vadd.f32 %v919_v25, %v742_v40 }
  0xfb   : > { %v1106_v28 = vadd.f32 %v1087_v22, %v1021_v24  ;;  %v1284_v29 = vpop.f32.mrf.mxu0  ;;  %v577_v22 = vadd.f32 %v2233_v2, %v379_v21 }
  0xfd   : > { %v1300_v27 = vadd.f32 %v1281_v46, %v1106_v28 }
  0xff   : > { %v1312_v32 = vadd.f32 %v2240_v16, %v1300_v27 }
 0x100   : > { %v1005_v34 = vpop.f32.mrf.mxu2  ;;  %v1090_v35 = vpop.f32.mrf.mxu3 }
 0x101   : > { %v1320_v43 = vmax.f32 %v1312_v32, 0.0  ;;  %v1022_v44 = vadd.f32 %v1005_v34, %v936_v33  ;;  %v921_v45 = vpop.f32.mrf.mxu1 }
 0x102   : > { %v937_v48 = vadd.f32 %v921_v45, %v743_v47 }
 0x103   : > { %v1743_v15 = vpack.c.bf16 %v1320_v43, %v1319_v38  ;;  %v1286_v37 = vpop.f32.mrf.mxu0  ;;  %v1107_v41 = vadd.f32 %v1090_v35, %v1022_v44 }
 0x105   : > { %1744 = vst [vmem:[%s2248_s9] sm:$0xff] %v1743_v15   ;;  %v1301_v40 = vadd.f32 %v1284_v29, %v1107_v41  ;;  %v662_v29 = vadd.f32 %v2235_v3, %v577_v22 }
 0x107   : > { %v1313_v60 = vadd.f32 %v2240_v16, %v1301_v40  ;;  %v747_v33 = vadd.f32 %v2229_v0, %v662_v29 }
 0x108   : > { %v1007_v49 = vpop.f32.mrf.mxu2  ;;  %v1092_v51 = vpop.f32.mrf.mxu3 }
 0x109   : > { %v1023_v56 = vadd.f32 %v1007_v49, %v937_v48  ;;  %v924_v57 = vpop.f32.mrf.mxu1  ;;  %v1321_v8 = vmax.f32 %v1313_v60, 0.0 }
 0x10a   : > { %v938_v39 = vadd.f32 %v924_v57, %v2221_v53 }
 0x10b   : > { %v1108_v58 = vadd.f32 %v1092_v51, %v1023_v56  ;;  %v1289_v63 = vpop.f32.mrf.mxu0 }
 0x10d   : > { %v1302_v61 = vadd.f32 %v1286_v37, %v1108_v58 }
 0x10f   : > { %v1314_v4 = vadd.f32 %v2240_v16, %v1302_v61 }
 0x110   : > { %v1010_v5 = vpop.f32.mrf.mxu2  ;;  %v1095_v6 = vpop.f32.mrf.mxu3 }
 0x111   : > { %v1322_v9 = vmax.f32 %v1314_v4, 0.0  ;;  %v1024_v10 = vadd.f32 %v1010_v5, %v938_v39  ;;  %v926_v17 = vpop.f32.mrf.mxu1 }
 0x112   : > { %v939_v12 = vadd.f32 %v926_v17, %v745_v54 }
 0x113   : > { %v1748_v50 = vpack.c.bf16 %v1322_v9, %v1321_v8  ;;  %v1109_v11 = vadd.f32 %v1095_v6, %v1024_v10  ;;  %v1291_v13 = vpop.f32.mrf.mxu0 }
 0x115   : > { %1760 = vst [vmem:[%s2248_s9 + $0x8] sm:$0xff] %v1748_v50   ;;  %v1303_v19 = vadd.f32 %v1289_v63, %v1109_v11 }
 0x117   : > { %v1315_v23 = vadd.f32 %v2240_v16, %v1303_v19 }
 0x118   : > { %v1012_v46 = vpop.f32.mrf.mxu2  ;;  %v1097_v14 = vpop.f32.mrf.mxu3 }
 0x119   : > { %v1025_v20 = vadd.f32 %v1012_v46, %v939_v12  ;;  %v929_v53 = vpop.f32.mrf.mxu1  ;;  %v1323_v30 = vmax.f32 %v1315_v23, 0.0 }
 0x11a   : > { %v940_v52 = vadd.f32 %v929_v53, %v2231_v1 }
 0x11b   : > { %v1110_v55 = vadd.f32 %v1097_v14, %v1025_v20  ;;  %v1294_v18 = vpop.f32.mrf.mxu0 }
 0x11d   : > { %v1304_v24 = vadd.f32 %v1291_v13, %v1110_v55 }
 0x11f   : > { %v1316_v25 = vadd.f32 %v2240_v16, %v1304_v24 }
 0x120   : > { %v1015_v26 = vpop.f32.mrf.mxu2  ;;  %v1100_v28 = vpop.f32.mrf.mxu3 }
 0x121   : > { %v1324_v31 = vmax.f32 %v1316_v25, 0.0  ;;  %v1026_v27 = vadd.f32 %v1015_v26, %v940_v52  ;;  %v931_v32 = vpop.f32.mrf.mxu1 }
 0x122   : > { %v941_v34 = vadd.f32 %v931_v32, %v747_v33 }
 0x123   : > { %v1753_v62 = vpack.c.bf16 %v1324_v31, %v1323_v30  ;;  %v1111_v2 = vadd.f32 %v1100_v28, %v1026_v27  ;;  %v1296_v43 = vpop.f32.mrf.mxu0 }
 0x125   : > { %1761 = vst [vmem:[%s2248_s9 + $0x10] sm:$0xff] %v1753_v62   ;;  %v1305_v36 = vadd.f32 %v1294_v18, %v1111_v2 }
 0x127   : > { %v1317_v44 = vadd.f32 %v2240_v16, %v1305_v36 }
 0x128   : > { %v1017_v35 = vpop.f32.mrf.mxu2  ;;  %v1102_v38 = vpop.f32.mrf.mxu3 }
 0x129   : > { %v1027_v1 = vadd.f32 %v1017_v35, %v941_v34  ;;  %v1325_v15 = vmax.f32 %v1317_v44, 0.0 }
 0x12b   : > { %v1112_v3 = vadd.f32 %v1102_v38, %v1027_v1 }
 0x12d   : > { %v1306_v45 = vadd.f32 %v1296_v43, %v1112_v3 }
 0x12f   : > { %v1318_v0 = vadd.f32 %v2240_v16, %v1306_v45 }
 0x131   : > { %v1326_v37 = vmax.f32 %v1318_v0, 0.0 }
 0x133   : > { %v1758_v41 = vpack.c.bf16 %v1326_v37, %v1325_v15 }
 0x135   : > { %1762 = vst [vmem:[%s2248_s9 + $0x18] sm:$0xff] %v1758_v41  }
 0x136   : > { %1852 = shalt.err (!%p1849_p5)
}
 0x137   : > { %s1905_s6 = smov 64   ;;  %s1906_s7 = smov 4  }
 0x138   : > { %1767 = dma.vmem_to_hbm [thread:$0]  (%p1967_p4), %s1360_s21, 512, %s1362_s23, %s1344_s15, %s1905_s6, %s1905_s6, %s1906_s7  }
 0x139 PF: > { %p1773_p6 = scmp.ge.s32.totalorder %s1903_s17, 2  ;;  %s1376_s8 = sand.u32 1, %s1883_s12  }
 0x13a   : > { %s1377_s9 = scalar_lea.sflag [#allocation3], %s1376_s8 }
 0x13b   : > { %p1770_p7 = pnand %p1773_p6, %p1974_p8 }
 0x13d   : > { %p1771_p9 = pneg %p1770_p7 }
 0x13f   : > { %1878 = dma.done.wait (%p1771_p9), %s1377_s9, 512  }
 0x140   : > { %1880 = vsyncadd (%p1771_p9), %s1377_s9, 4294966784  ;;  %s16_s17 = sadd.s32 1, %s1903_s17   ;;  %s2320_s12 = smov %s1887_s13 }
 0x141   : > { %p13_p10 = scmp.ge.s32.totalorder %s16_s17, 4   ;;  %s2321_s13 = smov %s1891_s14 }
 0x142   : > { %s2322_s14 = smov %s1980_s25  ;;  %s2323_s15 = smov %s1899_s16 }
 0x143   : > { %s2324_s16 = smov %s2326_s20  ;;  %15 = sbr.rel (!%p13_p10) target bundleno = 4 (0x4), region = 87 }
 0x148   :  { %1383 = vsyncpa [#allocation3], 1 }
 0x149   :  { %1385 = vsyncpa [#allocation3 + $0x1], 1 }

</bundles_post_ra>
